<compile_context>
chip_gen: v7x
topology: tpu7x:2x2x1
jax: 0.10.0
libtpu: 0.0.40
codegen_flags: <defaults>
</compile_context>

<pallas_src>
import jax
import jax.numpy as jnp
from jax.experimental import pallas as pl
from jax.experimental.pallas import tpu as pltpu


def disentangler_kernel(x_ref, w_ref, scale_ref, shift_ref, o_ref):
    # One full-K matmul per output tile, fused BN-affine + ReLU epilogue.
    y = jnp.dot(x_ref[...], w_ref[...], preferred_element_type=jnp.float32)
    y = y * scale_ref[...] + shift_ref[...]
    o_ref[...] = jnp.maximum(y, 0.0).astype(o_ref.dtype)


def disentangler_forward(x, w_t, bias, bn_gamma, bn_beta, bn_mean, bn_var,
                         *, eps=1e-5, tm=256, tn=256):
    """x: (N, D) f32.  w_t: (D, D) = W.T (in, out).  Others: (D,)."""
    N, D = x.shape
    tm = min(tm, N)
    tn = min(tn, D)
    assert N % tm == 0 and D % tn == 0, "N/D must be multiples of the tile sizes"

    # Fold BatchNorm (eval mode) AND the linear bias into per-feature scale/shift:
    #   (x@W + b - mean) / sqrt(var+eps) * gamma + beta
    # = (x@W) * scale + (b*scale + beta - mean*scale)
    scale = bn_gamma / jnp.sqrt(bn_var + eps)                    # (D,)
    shift = bias * scale + bn_beta - bn_mean * scale             # (D,)

    scale2 = scale.reshape(1, D)
    shift2 = shift.reshape(1, D)

    grid = (N // tm, D // tn)

    return pl.pallas_call(
        disentangler_kernel,
        out_shape=jax.ShapeDtypeStruct((N, D), x.dtype),
        grid_spec=pltpu.PrefetchScalarGridSpec(
            num_scalar_prefetch=0,
            grid=grid,
            in_specs=[
                pl.BlockSpec((tm, D), lambda i, j: (i, 0)),    # x row panel
                pl.BlockSpec((D, tn), lambda i, j: (0, j)),    # W panel (i-invariant)
                pl.BlockSpec((1, tn), lambda i, j: (0, j)),    # folded BN scale
                pl.BlockSpec((1, tn), lambda i, j: (0, j)),    # folded BN+bias shift
            ],
            out_specs=pl.BlockSpec((tm, tn), lambda i, j: (i, j)),
        ),
        compiler_params=pltpu.CompilerParams(
            dimension_semantics=("parallel", "parallel"),
        ),
    )(x, w_t, scale2, shift2)


def reference_forward(x, w_t, bias, bn_gamma, bn_beta, bn_mean, bn_var, eps=1e-5):
    y = x @ w_t + bias
    y = (y - bn_mean) / jnp.sqrt(bn_var + eps) * bn_gamma + bn_beta
    y = jnp.maximum(y, 0.0)
    # TODO(synk): F.dropout(training=True) would require RNG masking; identity at eval.
    return y


if __name__ == "__main__":
    N, D = 16, 256   # batch, emb_dim

    key = jax.random.PRNGKey(0)
    kx, kw, kb, kg, kbe, km, kv = jax.random.split(key, 7)

    x = jax.random.normal(kx, (N, D), dtype=jnp.float32)

    # nn.Linear(emb_dim, emb_dim): weight (out, in), bias (out,)
    w = jax.random.normal(kw, (D, D), dtype=jnp.float32) * (1.0 / jnp.sqrt(D))
    bias = jax.random.normal(kb, (D,), dtype=jnp.float32) * 0.1
    w_t = w.T  # (in, out) for x @ W

    # BatchNorm1d(emb_dim) parameters / running stats (deterministic, non-trivial)
    bn_gamma = 1.0 + 0.1 * jax.random.normal(kg, (D,), dtype=jnp.float32)
    bn_beta = 0.1 * jax.random.normal(kbe, (D,), dtype=jnp.float32)
    bn_mean = 0.05 * jax.random.normal(km, (D,), dtype=jnp.float32)
    bn_var = 1.0 + 0.2 * jax.random.uniform(kv, (D,), dtype=jnp.float32)

    out = disentangler_forward(x, w_t, bias, bn_gamma, bn_beta, bn_mean, bn_var)
    out = jax.block_until_ready(out)

    ref = reference_forward(x, w_t, bias, bn_gamma, bn_beta, bn_mean, bn_var)
    assert out.shape == (N, D)
    assert jnp.allclose(out, ref, atol=1e-4, rtol=1e-4), "mismatch vs reference"

    print("KERNEL_OK")
</pallas_src>

<mosaic_0001>
module attributes {stable_mosaic.version = 11 : i64} {
  func.func @disentangler_kernel(%arg0: i32, %arg1: i32, %arg2: memref<16x256xf32, #tpu.memory_space<vmem>>, %arg3: memref<256x256xf32, #tpu.memory_space<vmem>>, %arg4: memref<1x256xf32, #tpu.memory_space<vmem>>, %arg5: memref<1x256xf32, #tpu.memory_space<vmem>>, %arg6: memref<16x256xf32, #tpu.memory_space<vmem>>) attributes {dimension_semantics = [#tpu.dimension_semantics<parallel>, #tpu.dimension_semantics<parallel>], iteration_bounds = array<i64: 1, 1>, scalar_prefetch = 0 : i64, scratch_operands = 0 : i64, tpu.core_type = #tpu.core_type<tc>, window_params = [{transform_indices = @transform_0, window_bounds = array<i64: 16, 256>}, {transform_indices = @transform_1, window_bounds = array<i64: 256, 256>}, {transform_indices = @transform_2, window_bounds = array<i64: 1, 256>}, {transform_indices = @transform_3, window_bounds = array<i64: 1, 256>}, {transform_indices = @transform_4, window_bounds = array<i64: 16, 256>}]} {
    %c0 = arith.constant 0 : index
    %c0_0 = arith.constant 0 : index
    %0 = vector.load %arg2[%c0, %c0_0] : memref<16x256xf32, #tpu.memory_space<vmem>>, vector<16x256xf32>
    %c0_1 = arith.constant 0 : index
    %c0_2 = arith.constant 0 : index
    %1 = vector.load %arg3[%c0_1, %c0_2] : memref<256x256xf32, #tpu.memory_space<vmem>>, vector<256x256xf32>
    %cst = arith.constant dense<0.000000e+00> : vector<16x256xf32>
    %2 = tpu.matmul %0, %1, %cst {dimension_numbers = #tpu.dot_dimension_numbers<[1], [0], [0], [1], [0, 0, 1, 1], [], []>} : vector<16x256xf32>, vector<256x256xf32>, vector<16x256xf32> -> vector<16x256xf32>
    %c0_3 = arith.constant 0 : index
    %c0_4 = arith.constant 0 : index
    %3 = vector.load %arg4[%c0_3, %c0_4] : memref<1x256xf32, #tpu.memory_space<vmem>>, vector<1x256xf32>
    %4 = vector.broadcast %3 : vector<1x256xf32> to vector<16x256xf32>
    %5 = arith.mulf %2, %4 : vector<16x256xf32>
    %c0_5 = arith.constant 0 : index
    %c0_6 = arith.constant 0 : index
    %6 = vector.load %arg5[%c0_5, %c0_6] : memref<1x256xf32, #tpu.memory_space<vmem>>, vector<1x256xf32>
    %7 = vector.broadcast %6 : vector<1x256xf32> to vector<16x256xf32>
    %8 = arith.addf %5, %7 : vector<16x256xf32>
    %cst_7 = arith.constant 0.000000e+00 : f32
    %9 = vector.broadcast %cst_7 : f32 to vector<16x256xf32>
    %10 = arith.maximumf %8, %9 : vector<16x256xf32>
    %c0_8 = arith.constant 0 : index
    %c0_9 = arith.constant 0 : index
    %11 = vector.load %arg6[%c0_8, %c0_9] : memref<16x256xf32, #tpu.memory_space<vmem>>, vector<16x256xf32>
    tpu.vector_store %arg6[%c0_8, %c0_9], %10 {strides = array<i32>} : memref<16x256xf32, #tpu.memory_space<vmem>>, vector<16x256xf32>,
    return
  }
  func.func @transform_0(%arg0: i32, %arg1: i32) -> (i32, i32) {
    %c0_i32 = arith.constant 0 : i32
    %c0_i32_0 = arith.constant 0 : i32
    return %arg0, %c0_i32 : i32, i32
  }
  func.func @transform_1(%arg0: i32, %arg1: i32) -> (i32, i32) {
    %c0_i32 = arith.constant 0 : i32
    %c0_i32_0 = arith.constant 0 : i32
    return %c0_i32, %arg1 : i32, i32
  }
  func.func @transform_2(%arg0: i32, %arg1: i32) -> (i32, i32) {
    %c0_i32 = arith.constant 0 : i32
    %c0_i32_0 = arith.constant 0 : i32
    return %c0_i32, %arg1 : i32, i32
  }
  func.func @transform_3(%arg0: i32, %arg1: i32) -> (i32, i32) {
    %c0_i32 = arith.constant 0 : i32
    %c0_i32_0 = arith.constant 0 : i32
    return %c0_i32, %arg1 : i32, i32
  }
  func.func @transform_4(%arg0: i32, %arg1: i32) -> (i32, i32) {
    %c0_i32 = arith.constant 0 : i32
    return %arg0, %arg1 : i32, i32
  }
}

</mosaic_0001>

<bundles_post_ra>
// kernel: tpu_custom_call.1
= control target key start
LH: loop header
LB: loop body
LE: loop exit
PB: predicated region body
PF: predicated region fallthrough
CT: control target
= control target key end

     0   :  { %9 = vsyncpa [#allocation3], 0  ;;  %s503_s0 = inlined_call_operand.hbm [shape: f32[16,256], index: 0, kind: input, shape index: {}]   ;;  %s504_s1 = inlined_call_operand.hbm [shape: f32[256,256], index: 1, kind: input, shape index: {}]   ;;  %s505_s2 = inlined_call_operand.vmem [shape: f32[1,256], index: 2, kind: input, shape index: {}]   ;;  %s506_s3 = inlined_call_operand.vmem [shape: f32[1,256], index: 3, kind: input, shape index: {}]   ;;  %s507_s4 = inlined_call_operand.hbm [shape: f32[16,256], index: 4, kind: output, shape index: {}]  }
   0x1   :  { %10 = vsyncpa [#allocation6], 0 }
   0x2   :  { %11 = vsyncpa [#allocation4], 0  ;;  %s422_s15 = smov [#allocation2]   ;;  %s350_s19 = scalar_lea.hbm %s503_s0, 512 }
   0x3   :  { %s17_s16 = sshll.u32 %s422_s15, 4  ;;  %p351_p0 = scmp.ne.s32.totalorder %s503_s0, %s350_s19  ;;  %s18_s16 = int_to_ptr.vmem [resolvable:$true] %s17_s16 }
   0x4   :  { %p354_p1 = scmp.lt.u32.totalorder %s350_s19, %s503_s0 }
   0x6   :  { %p356_p2 = pnand %p354_p1, %p351_p0 }
   0x8   :  { %359 = shalt.err (!%p356_p2)
}
   0x9   :  { %s360_s24 = scalar_lea.vmem %s18_s16, 512  ;;  %p365_p4 = scmp.lt.s32.totalorder %s18_s16, %s18_s16 }
   0xa   :  { %p361_p3 = scmp.ne.s32.totalorder %s18_s16, %s360_s24  ;;  %p366_p5 = scmp.lt.s32.totalorder %s360_s24, %s360_s24 }
   0xc   :  { %p367_p6 = por %p366_p5, %p365_p4 }
   0xe   :  { %p368_p7 = pnand %p367_p6, %p361_p3 }
  0x10   :  { %371 = shalt.err (!%p368_p7)
}
  0x11   :  { %s423_s25 = smov 256   ;;  %s424_s26 = smov 16  }
  0x12   :  { %23 = dma.hbm_to_vmem [thread:$0]  %s503_s0, 512, %s18_s16, [#allocation3], %s423_s25, %s423_s25, %s424_s26  }
  0x13   :  { %s425_s29 = smov [#allocation5]   ;;  %s372_s7 = scalar_lea.hbm %s504_s1, 8192 }
  0x14   :  { %s29_s30 = sshll.u32 %s425_s29, 4  ;;  %p373_p8 = scmp.ne.s32.totalorder %s504_s1, %s372_s7  ;;  %s30_s30 = int_to_ptr.vmem [resolvable:$true] %s29_s30 }
  0x15   :  { %p376_p9 = scmp.lt.u32.totalorder %s372_s7, %s504_s1 }
  0x17   :  { %p378_p10 = pnand %p376_p9, %p373_p8 }
  0x19   :  { %381 = shalt.err (!%p378_p10)
}
  0x1a   :  { %s382_s12 = scalar_lea.vmem %s30_s30, 8192  ;;  %p387_p12 = scmp.lt.s32.totalorder %s30_s30, %s30_s30 }
  0x1b   :  { %p383_p11 = scmp.ne.s32.totalorder %s30_s30, %s382_s12  ;;  %p388_p13 = scmp.lt.s32.totalorder %s382_s12, %s382_s12 }
  0x1d   :  { %p389_p0 = por %p388_p13, %p387_p12 }
  0x1f   :  { %p390_p1 = pnand %p389_p0, %p383_p11 }
  0x21   :  { %393 = shalt.err (!%p390_p1)
}
  0x22   :  { %35 = dma.hbm_to_vmem [thread:$0]  %s504_s1, 8192, %s30_s30, [#allocation6], %s423_s25, %s423_s25, %s424_s26  }
  0x23   :  { %416 = dma.done.wait [#allocation3], 512  }
  0x24   :  { %417 = vsyncadd [#allocation3], 4294966784 }
  0x25   :  { %418 = dma.done.wait [#allocation6], 8192  }
  0x26   :  { %419 = vsyncadd [#allocation6], 4294959104  ;;  %v51_v0 = vld [vmem:[#allocation5 + $0x8] sm:$0xff]  ;;  %v53_v1 = vld [vmem:[#allocation5 + $0x18] sm:$0xff] }
  0x27   :  { %v50_v2 = vld [vmem:[#allocation5] sm:$0xff]  ;;  %v249_v3 = vpack.c.bf16 %v53_v1, %v51_v0  ;;  %v52_v4 = vld [vmem:[#allocation5 + $0x10] sm:$0xff]  ;;  %v55_v5 = vld [vmem:[#allocation5 + $0x28] sm:$0xff] }
  0x28   :  { %v57_v6 = vld [vmem:[#allocation5 + $0x38] sm:$0xff]  ;;  %v251_v7 = vpack.c.bf16 %v52_v4, %v50_v2  ;;  %v54_v9 = vld [vmem:[#allocation5 + $0x20] sm:$0xff]  ;;  %v56_v10 = vld [vmem:[#allocation5 + $0x30] sm:$0xff] }
  0x29   :  { %v253_v8 = vpack.c.bf16 %v57_v6, %v55_v5  ;;  %v59_v11 = vld [vmem:[#allocation5 + $0x48] sm:$0xff]  ;;  %250 = vmatprep.subr.bf16.mxu0 %v249_v3  ;;  %313 = vmatprep.subr.bf16.mxu1 %v249_v3  ;;  %v61_v12 = vld [vmem:[#allocation5 + $0x58] sm:$0xff]  ;;  %v255_v13 = vpack.c.bf16 %v56_v10, %v54_v9  ;;  %v58_v15 = vld [vmem:[#allocation5 + $0x40] sm:$0xff] }
  0x2a   :  { %252 = vmatpush1.bf16.msra.mxu0 %v251_v7  ;;  %329 = vmatpush1.bf16.msra.mxu1 %v251_v7  ;;  %v257_v14 = vpack.c.bf16 %v61_v12, %v59_v11  ;;  %v60_v16 = vld [vmem:[#allocation5 + $0x50] sm:$0xff]  ;;  %v63_v17 = vld [vmem:[#allocation5 + $0x68] sm:$0xff]  ;;  %v65_v18 = vld [vmem:[#allocation5 + $0x78] sm:$0xff] }
  0x2b   :  { %254 = vmatprep.subr.bf16.mxu0 %v253_v8  ;;  %314 = vmatprep.subr.bf16.mxu1 %v253_v8  ;;  %v259_v19 = vpack.c.bf16 %v60_v16, %v58_v15  ;;  %v261_v20 = vpack.c.bf16 %v65_v18, %v63_v17  ;;  %v62_v21 = vld [vmem:[#allocation5 + $0x60] sm:$0xff]  ;;  %v64_v22 = vld [vmem:[#allocation5 + $0x70] sm:$0xff]  ;;  %v67_v23 = vld [vmem:[#allocation5 + $0x88] sm:$0xff] }
  0x2c   :  { %v69_v24 = vld [vmem:[#allocation5 + $0x98] sm:$0xff]  ;;  %v263_v25 = vpack.c.bf16 %v64_v22, %v62_v21  ;;  %v66_v27 = vld [vmem:[#allocation5 + $0x80] sm:$0xff]  ;;  %v68_v28 = vld [vmem:[#allocation5 + $0x90] sm:$0xff] }
  0x2d   :  { %v265_v26 = vpack.c.bf16 %v69_v24, %v67_v23  ;;  %v71_v29 = vld [vmem:[#allocation5 + $0xa8] sm:$0xff]  ;;  %v73_v30 = vld [vmem:[#allocation5 + $0xb8] sm:$0xff]  ;;  %v267_v31 = vpack.c.bf16 %v68_v28, %v66_v27  ;;  %v70_v33 = vld [vmem:[#allocation5 + $0xa0] sm:$0xff] }
  0x2e   :  { %256 = vmatpush1.bf16.msra.mxu0 %v255_v13  ;;  %330 = vmatpush1.bf16.msra.mxu1 %v255_v13  ;;  %v269_v32 = vpack.c.bf16 %v73_v30, %v71_v29  ;;  %v72_v34 = vld [vmem:[#allocation5 + $0xb0] sm:$0xff]  ;;  %v75_v35 = vld [vmem:[#allocation5 + $0xc8] sm:$0xff]  ;;  %v77_v36 = vld [vmem:[#allocation5 + $0xd8] sm:$0xff] }
  0x2f   :  { %258 = vmatprep.subr.bf16.mxu0 %v257_v14  ;;  %315 = vmatprep.subr.bf16.mxu1 %v257_v14  ;;  %v271_v37 = vpack.c.bf16 %v72_v34, %v70_v33  ;;  %v74_v38 = vld [vmem:[#allocation5 + $0xc0] sm:$0xff]  ;;  %v273_v39 = vpack.c.bf16 %v77_v36, %v75_v35  ;;  %v76_v40 = vld [vmem:[#allocation5 + $0xd0] sm:$0xff]  ;;  %v47_v41 = vld [vmem:[#allocation2 + $0x8] sm:$0xff]  ;;  %v193_v36 = vlaneseq }
  0x30   :  { %v49_v42 = vld [vmem:[#allocation2 + $0x18] sm:$0xff]  ;;  %v79_v43 = vld [vmem:[#allocation5 + $0xe8] sm:$0xff]  ;;  %178 = vmatprep.mubr.f32.mxu0 %v47_v41  ;;  %v275_v45 = vpack.c.bf16 %v76_v40, %v74_v38  ;;  %v78_v47 = vld [vmem:[#allocation5 + $0xe0] sm:$0xff] }
  0x31   :  { %v81_v44 = vld [vmem:[#allocation5 + $0xf8] sm:$0xff]  ;;  %184 = vmatprep.mubr.f32.mxu1 %v49_v42  ;;  %v80_v48 = vld [vmem:[#allocation5 + $0xf0] sm:$0xff]  ;;  %v83_v49 = vld [vmem:[#allocation5 + $0x108] sm:$0xff] }
  0x32   :  { %260 = vmatpush1.bf16.msra.mxu0 %v259_v19  ;;  %331 = vmatpush1.bf16.msra.mxu1 %v259_v19  ;;  %v277_v46 = vpack.c.bf16 %v81_v44, %v79_v43  ;;  %v85_v50 = vld [vmem:[#allocation5 + $0x118] sm:$0xff]  ;;  %v279_v51 = vpack.c.bf16 %v80_v48, %v78_v47  ;;  %v82_v53 = vld [vmem:[#allocation5 + $0x100] sm:$0xff]  ;;  %v84_v54 = vld [vmem:[#allocation5 + $0x110] sm:$0xff] }
  0x33   :  { %262 = vmatprep.subr.bf16.mxu0 %v261_v20  ;;  %316 = vmatprep.subr.bf16.mxu1 %v261_v20  ;;  %v281_v52 = vpack.c.bf16 %v85_v50, %v83_v49  ;;  %v87_v55 = vld [vmem:[#allocation5 + $0x128] sm:$0xff]  ;;  %v89_v56 = vld [vmem:[#allocation5 + $0x138] sm:$0xff]  ;;  %v283_v57 = vpack.c.bf16 %v84_v54, %v82_v53  ;;  %v86_v59 = vld [vmem:[#allocation5 + $0x120] sm:$0xff] }
  0x34   :  { %v285_v58 = vpack.c.bf16 %v89_v56, %v87_v55  ;;  %v88_v60 = vld [vmem:[#allocation5 + $0x130] sm:$0xff]  ;;  %v91_v61 = vld [vmem:[#allocation5 + $0x148] sm:$0xff]  ;;  %v93_v62 = vld [vmem:[#allocation5 + $0x158] sm:$0xff] }
  0x35   :  { %v287_v63 = vpack.c.bf16 %v88_v60, %v86_v59  ;;  %v289_v0 = vpack.c.bf16 %v93_v62, %v91_v61  ;;  %v90_v1 = vld [vmem:[#allocation5 + $0x140] sm:$0xff]  ;;  %v92_v2 = vld [vmem:[#allocation5 + $0x150] sm:$0xff]  ;;  %v95_v3 = vld [vmem:[#allocation5 + $0x168] sm:$0xff] }
  0x36   :  { %264 = vmatpush1.bf16.msra.mxu0 %v263_v25  ;;  %332 = vmatpush1.bf16.msra.mxu1 %v263_v25  ;;  %v97_v4 = vld [vmem:[#allocation5 + $0x178] sm:$0xff]  ;;  %v291_v5 = vpack.c.bf16 %v92_v2, %v90_v1  ;;  %v94_v7 = vld [vmem:[#allocation5 + $0x160] sm:$0xff]  ;;  %v96_v8 = vld [vmem:[#allocation5 + $0x170] sm:$0xff] }
  0x37   :  { %266 = vmatprep.subr.bf16.mxu0 %v265_v26  ;;  %317 = vmatprep.subr.bf16.mxu1 %v265_v26  ;;  %v293_v6 = vpack.c.bf16 %v97_v4, %v95_v3  ;;  %v99_v9 = vld [vmem:[#allocation5 + $0x188] sm:$0xff]  ;;  %v101_v10 = vld [vmem:[#allocation5 + $0x198] sm:$0xff]  ;;  %v295_v11 = vpack.c.bf16 %v96_v8, %v94_v7  ;;  %v98_v13 = vld [vmem:[#allocation5 + $0x180] sm:$0xff] }
  0x38   :  { %v297_v12 = vpack.c.bf16 %v101_v10, %v99_v9  ;;  %v100_v14 = vld [vmem:[#allocation5 + $0x190] sm:$0xff]  ;;  %v103_v15 = vld [vmem:[#allocation5 + $0x1a8] sm:$0xff]  ;;  %v105_v16 = vld [vmem:[#allocation5 + $0x1b8] sm:$0xff] }
  0x39   :  { %v299_v17 = vpack.c.bf16 %v100_v14, %v98_v13  ;;  %v301_v18 = vpack.c.bf16 %v105_v16, %v103_v15  ;;  %v102_v19 = vld [vmem:[#allocation5 + $0x1a0] sm:$0xff]  ;;  %v104_v20 = vld [vmem:[#allocation5 + $0x1b0] sm:$0xff]  ;;  %v107_v21 = vld [vmem:[#allocation5 + $0x1c8] sm:$0xff] }
  0x3a   :  { %268 = vmatpush1.bf16.msra.mxu0 %v267_v31  ;;  %333 = vmatpush1.bf16.msra.mxu1 %v267_v31  ;;  %v109_v22 = vld [vmem:[#allocation5 + $0x1d8] sm:$0xff]  ;;  %v303_v23 = vpack.c.bf16 %v104_v20, %v102_v19  ;;  %v106_v25 = vld [vmem:[#allocation5 + $0x1c0] sm:$0xff]  ;;  %v108_v26 = vld [vmem:[#allocation5 + $0x1d0] sm:$0xff] }
  0x3b   :  { %270 = vmatprep.subr.bf16.mxu0 %v269_v32  ;;  %318 = vmatprep.subr.bf16.mxu1 %v269_v32  ;;  %v305_v24 = vpack.c.bf16 %v109_v22, %v107_v21  ;;  %v111_v27 = vld [vmem:[#allocation5 + $0x1e8] sm:$0xff]  ;;  %v113_v28 = vld [vmem:[#allocation5 + $0x1f8] sm:$0xff]  ;;  %v307_v29 = vpack.c.bf16 %v108_v26, %v106_v25  ;;  %v110_v31 = vld [vmem:[#allocation5 + $0x1e0] sm:$0xff] }
  0x3c   :  { %v309_v30 = vpack.c.bf16 %v113_v28, %v111_v27  ;;  %v112_v32 = vld [vmem:[#allocation5 + $0x1f0] sm:$0xff]  ;;  %v46_v34 = vld [vmem:[#allocation2] sm:$0xff] }
  0x3d   :  { %v311_v33 = vpack.c.bf16 %v112_v32, %v110_v31  ;;  %v48_v35 = vld [vmem:[#allocation2 + $0x10] sm:$0xff]  ;;  %v207_v41 = vld [vmem:[%s506_s3] sm:$0x3] }
  0x3e   :  { %272 = vmatpush1.bf16.msra.mxu0 %v271_v37  ;;  %334 = vmatpush1.bf16.msra.mxu1 %v271_v37  ;;  %v194_v37 = vshrl.u32 %v193_v36, 7 }
  0x3f   :  { %274 = vmatprep.subr.bf16.mxu0 %v273_v39  ;;  %319 = vmatprep.subr.bf16.mxu1 %v273_v39  ;;  %v191_v39 = vld [vmem:[%s505_s2] sm:$0x3]  ;;  %s426_s2 = smov [#allocation7]  }
  0x40   :  { %v195_v38 = vsub.s32 0, %v194_v37  ;;  %v199_v40 = vsub.s32 1, %v194_v37  ;;  %s236_s17 = sshll.u32 %s426_s2, 4  ;;  %s237_s17 = int_to_ptr.vmem [resolvable:$true] %s236_s17 }
  0x41   :  { %s394_s3 = scalar_lea.vmem %s237_s17, 512  ;;  %p399_p3 = scmp.lt.s32.totalorder %s237_s17, %s237_s17 }
  0x42   :  { %276 = vmatpush1.bf16.msra.mxu0 %v275_v45  ;;  %335 = vmatpush1.bf16.msra.mxu1 %v275_v45  ;;  %v196_v42 = vrot.slane %v191_v39, %v195_v38  ;;  %v200_v43 = vrot.slane %v191_v39, %v199_v40  ;;  %v212_v44 = vrot.slane %v207_v41, %v195_v38  ;;  %p395_p2 = scmp.ne.s32.totalorder %s237_s17, %s394_s3  ;;  %p400_p4 = scmp.lt.s32.totalorder %s394_s3, %s394_s3 }
  0x43   :  { %278 = vmatprep.subr.bf16.mxu0 %v277_v46  ;;  %320 = vmatprep.subr.bf16.mxu1 %v277_v46  ;;  %v216_v47 = vrot.slane %v207_v41, %v199_v40 }
  0x44   :  { %p401_p5 = por %p400_p4, %p399_p3 }
  0x46   :  { %280 = vmatpush1.bf16.msra.mxu0 %v279_v51  ;;  %336 = vmatpush1.bf16.msra.mxu1 %v279_v51  ;;  %p402_p6 = pnand %p401_p5, %p395_p2 }
  0x47   :  { %282 = vmatprep.subr.bf16.mxu0 %v281_v52  ;;  %321 = vmatprep.subr.bf16.mxu1 %v281_v52 }
  0x4a   :  { %284 = vmatpush1.bf16.msra.mxu0 %v283_v57  ;;  %337 = vmatpush1.bf16.msra.mxu1 %v283_v57 }
  0x4b   :  { %286 = vmatprep.subr.bf16.mxu0 %v285_v58  ;;  %322 = vmatprep.subr.bf16.mxu1 %v285_v58 }
  0x4e   :  { %288 = vmatpush1.bf16.msra.mxu0 %v287_v63  ;;  %338 = vmatpush1.bf16.msra.mxu1 %v287_v63 }
  0x4f   :  { %290 = vmatprep.subr.bf16.mxu0 %v289_v0  ;;  %323 = vmatprep.subr.bf16.mxu1 %v289_v0 }
  0x52   :  { %292 = vmatpush1.bf16.msra.mxu0 %v291_v5  ;;  %339 = vmatpush1.bf16.msra.mxu1 %v291_v5 }
  0x53   :  { %294 = vmatprep.subr.bf16.mxu0 %v293_v6  ;;  %324 = vmatprep.subr.bf16.mxu1 %v293_v6 }
  0x56   :  { %296 = vmatpush1.bf16.msra.mxu0 %v295_v11  ;;  %340 = vmatpush1.bf16.msra.mxu1 %v295_v11 }
  0x57   :  { %298 = vmatprep.subr.bf16.mxu0 %v297_v12  ;;  %325 = vmatprep.subr.bf16.mxu1 %v297_v12 }
  0x5a   :  { %300 = vmatpush1.bf16.msra.mxu0 %v299_v17  ;;  %341 = vmatpush1.bf16.msra.mxu1 %v299_v17 }
  0x5b   :  { %302 = vmatprep.subr.bf16.mxu0 %v301_v18  ;;  %326 = vmatprep.subr.bf16.mxu1 %v301_v18 }
  0x5e   :  { %304 = vmatpush1.bf16.msra.mxu0 %v303_v23  ;;  %342 = vmatpush1.bf16.msra.mxu1 %v303_v23 }
  0x5f   :  { %306 = vmatprep.subr.bf16.mxu0 %v305_v24  ;;  %327 = vmatprep.subr.bf16.mxu1 %v305_v24 }
  0x62   :  { %308 = vmatpush1.bf16.msra.mxu0 %v307_v29  ;;  %343 = vmatpush1.bf16.msra.mxu1 %v307_v29 }
  0x63   :  { %310 = vmatprep.subr.bf16.mxu0 %v309_v30  ;;  %328 = vmatprep.subr.bf16.mxu1 %v309_v30 }
  0x66   :  { %312 = vmatpush1.bf16.msra.mxu0 %v311_v33  ;;  %344 = vmatpush1.bf16.msra.mxu1 %v311_v33 }
  0x69   :  { %179 = vmatmul.mubr.f32.vlgmr.msra.gmra.mrb[0].mxu0 %v46_v34  ;;  %185 = vmatmul.mubr.f32.vlgmr.msra.gmra.mrb[0].mxu1 %v48_v35 }
 0x13c   :  { %v180_v45 = vpop.f32.mrb[0].mxu0  ;;  %v186_v46 = vpop.f32.mrb[0].mxu1 }
 0x13d   :  { %v203_v48 = vmul.f32 %v196_v42, %v180_v45  ;;  %v205_v49 = vmul.f32 %v196_v42, %v186_v46  ;;  %v182_v50 = vpop.f32.mrb[1].mxu0  ;;  %v188_v51 = vpop.f32.mrb[1].mxu1 }
 0x13e   :  { %v204_v52 = vmul.f32 %v200_v43, %v182_v50  ;;  %v206_v53 = vmul.f32 %v200_v43, %v188_v51 }
 0x13f   :  { %v219_v54 = vadd.f32 %v212_v44, %v203_v48  ;;  %v221_v55 = vadd.f32 %v212_v44, %v205_v49 }
 0x140   :  { %v220_v56 = vadd.f32 %v216_v47, %v204_v52  ;;  %v222_v57 = vadd.f32 %v216_v47, %v206_v53 }
 0x141   :  { %v223_v58 = vmax.f32 %v219_v54, 0.0  ;;  %v225_v59 = vmax.f32 %v221_v55, 0.0 }
 0x142   :  { %v224_v60 = vmax.f32 %v220_v56, 0.0  ;;  %v226_v61 = vmax.f32 %v222_v57, 0.0 }
 0x143   :  { %227 = vst [vmem:[#allocation7] sm:$0xff] %v223_v58  ;;  %229 = vst [vmem:[#allocation7 + $0x10] sm:$0xff] %v225_v59 }
 0x144   :  { %228 = vst [vmem:[#allocation7 + $0x8] sm:$0xff] %v224_v60  ;;  %230 = vst [vmem:[#allocation7 + $0x18] sm:$0xff] %v226_v61 }
 0x145   :  { %405 = shalt.err (!%p402_p6)
}
 0x146   :  { %s406_s20 = scalar_lea.hbm %s507_s4, 512 }
 0x147   :  { %p407_p7 = scmp.ne.s32.totalorder %s507_s4, %s406_s20  ;;  %p410_p8 = scmp.lt.u32.totalorder %s406_s20, %s507_s4 }
 0x149   :  { %p412_p9 = pnand %p410_p8, %p407_p7 }
 0x14b   :  { %415 = shalt.err (!%p412_p9)
}
 0x14c   :  { %242 = dma.vmem_to_hbm [thread:$0]  %s237_s17, 512, %s507_s4, [#allocation4], %s423_s25, %s423_s25, %s424_s26  }
 0x14d   :  { %420 = dma.done.wait [#allocation4], 512  }
 0x14e   :  { %421 = vsyncadd [#allocation4], 4294966784 }
 0x14f   :  { %246 = vsyncpa [#allocation3], 1 }
 0x150   :  { %247 = vsyncpa [#allocation6], 1 }
 0x151   :  { %248 = vsyncpa [#allocation4], 1 }

</bundles_post_ra>
